<compile_context>
chip_gen: v5e
topology: v5e:2x2
jax: 0.10.0
libtpu: 0.0.40
codegen_flags: <defaults>
</compile_context>

<pallas_src>
import functools

import numpy as np
import jax
import jax.numpy as jnp
from jax.experimental import pallas as pl
from jax.experimental.pallas import tpu as pltpu

CONF_THRESH = 0.02
# Per-step live blocks are small (< 4 MB); 48 MiB leaves headroom on v7x's
# 64 MiB VMEM while being far above what these kernels need on v5e/v6e.
VMEM_LIMIT = 48 * 1024 * 1024


def _cparams(*sem):
    return pltpu.CompilerParams(dimension_semantics=sem,
                                vmem_limit_bytes=VMEM_LIMIT)


def _pick_tile(n, cap):
    """Largest multiple-of-8 divisor of n that is <= cap, else n (full dim)."""
    t = min(cap, n)
    t -= t % 8
    while t >= 8:
        if n % t == 0:
            return t
        t -= 8
    return n


# ----------------------------------------------------------------------------
# Fused separable bilinear resize (one kernel, both passes, VMEM intermediate)
# ----------------------------------------------------------------------------

def _resize_kernel(ah_ref, x_ref, awt_ref, o_ref, tmp_ref):
    # One (batch, channel) plane per grid step:
    #   tmp = Ah @ X    (row interpolation)     -- stays in VMEM scratch
    #   out = tmp @ AwT (column interpolation)  -- lane-dense (Wo on lanes)
    tmp_ref[...] = jnp.dot(ah_ref[...], x_ref[0, 0],
                           preferred_element_type=jnp.float32)
    o_ref[0, 0] = jnp.dot(tmp_ref[...], awt_ref[...],
                          preferred_element_type=jnp.float32)


def _bilinear_matrix(out_size, in_size):
    # PyTorch F.interpolate(mode='bilinear', align_corners=False) semantics.
    dst = np.arange(out_size, dtype=np.float64)
    src = (dst + 0.5) * (in_size / out_size) - 0.5
    src = np.clip(src, 0.0, in_size - 1)
    i0 = np.floor(src).astype(np.int64)
    i1 = np.minimum(i0 + 1, in_size - 1)
    w1 = (src - i0).astype(np.float32)
    w0 = (1.0 - w1).astype(np.float32)
    M = np.zeros((out_size, in_size), np.float32)
    M[np.arange(out_size), i0] += w0
    M[np.arange(out_size), i1] += w1
    return M


def resize_bilinear_nchw(x, out_hw, scale=1.0):
    # (B, C, H, W) -> (B, C, Ho, Wo); `scale` is folded into Ah for free.
    B, C, H, W = x.shape
    Ho, Wo = out_hw
    if (Ho, Wo) == (H, W):
        return x if scale == 1.0 else x * jnp.float32(scale)
    Ah = jnp.asarray(_bilinear_matrix(Ho, H) * np.float32(scale))   # (Ho, H)
    AwT = jnp.asarray(_bilinear_matrix(Wo, W).T)                    # (W, Wo)
    return pl.pallas_call(
        _resize_kernel,
        out_shape=jax.ShapeDtypeStruct((B, C, Ho, Wo), jnp.float32),
        grid=(B, C),
        in_specs=[pl.BlockSpec((Ho, H), lambda b, c: (0, 0)),
                  pl.BlockSpec((1, 1, H, W), lambda b, c: (b, c, 0, 0)),
                  pl.BlockSpec((W, Wo), lambda b, c: (0, 0))],
        out_specs=pl.BlockSpec((1, 1, Ho, Wo), lambda b, c: (b, c, 0, 0)),
        scratch_shapes=[pltpu.VMEM((Ho, W), jnp.float32)],
        compiler_params=_cparams("parallel", "parallel"),
    )(Ah, x, AwT)


# ----------------------------------------------------------------------------
# Fused 2-layer 3x3 conv flow head (W on lanes, VPU FMAs, row-chunk grid)
# ----------------------------------------------------------------------------

def _flow_head_kernel(w1_ref, b1_ref, w2_ref, b2_ref, x_ref, o_ref, h1_ref,
                      *, th, W, c_in, c_mid, c_out):
    # x_ref : (1, c_in, H + 4, W + 2)  zero-padded input, resident per batch
    # o_ref : (1, c_out, th, W)        lane-dense flow chunk
    # h1_ref: (c_mid, th + 2, W + 2)   conv1 activations incl. conv2 halo
    j = pl.program_id(1)
    r0 = j * th
    if th % 8 == 0:
        r0 = pl.multiple_of(r0, 8)

    h1_ref[...] = jnp.zeros_like(h1_ref)

    # --- conv1 + ReLU over h1 image rows [r0-1, r0+th] (halo for conv2) -----
    for co in range(c_mid):
        acc = jnp.full((th + 2, W), b1_ref[co], jnp.float32)
        for ci in range(c_in):
            for dy in range(3):
                rows = x_ref[0, ci, pl.ds(r0 + dy, th + 2), :]   # (th+2, W+2)
                for dx in range(3):
                    k = ((dy * 3 + dx) * c_in + ci) * c_mid + co
                    acc = acc + w1_ref[k] * rows[:, dx:dx + W]
        h1_ref[co, :, 1:W + 1] = jnp.maximum(acc, 0.0)

    # conv2 zero padding of h1: rows outside the image must be exact zeros.
    @pl.when(j == 0)
    def _():
        h1_ref[:, 0:1, :] = jnp.zeros((c_mid, 1, W + 2), jnp.float32)

    @pl.when(j == pl.num_programs(1) - 1)
    def _():
        h1_ref[:, th + 1:th + 2, :] = jnp.zeros((c_mid, 1, W + 2), jnp.float32)

    # --- conv2: flow chunk ----------------------------------------------------
    for co in range(c_out):
        acc = jnp.full((th, W), b2_ref[co], jnp.float32)
        for ci in range(c_mid):
            for dy in range(3):
                rows = h1_ref[ci, dy:dy + th, :]                  # (th, W+2)
                for dx in range(3):
                    k = ((dy * 3 + dx) * c_mid + ci) * c_out + co
                    acc = acc + w2_ref[k] * rows[:, dx:dx + W]
        o_ref[0, co, :, :] = acc


def synthetic_flownet(im1_nchw, im2_nchw, params):
    # TODO(synk): the real FlowNet2 stack (FlowNetC/S/SD + fusion, pretrained
    # checkpoint) is not reproducible in-script; replaced by a fused 2-layer
    # 3x3 conv flow head running as a single Pallas kernel.
    B, _, H, W = im1_nchw.shape
    c_in, c_mid, c_out = 6, 8, 2
    x6 = jnp.concatenate([im1_nchw, im2_nchw], axis=1)            # (B, 6, H, W)
    xpad = jnp.pad(x6, ((0, 0), (0, 0), (2, 2), (1, 1)))          # (B,6,H+4,W+2)
    th = _pick_tile(H, 16)      # small row chunks keep the unrolled body compact
    n_chunks = H // th
    kern = functools.partial(_flow_head_kernel, th=th, W=W,
                             c_in=c_in, c_mid=c_mid, c_out=c_out)
    smem = pl.BlockSpec(memory_space=pltpu.MemorySpace.SMEM)
    return pl.pallas_call(
        kern,
        out_shape=jax.ShapeDtypeStruct((B, c_out, H, W), jnp.float32),
        grid=(B, n_chunks),
        in_specs=[smem, smem, smem, smem,
                  # Full padded image stays resident in VMEM across the row
                  # axis (same block index) -> DMA'd once per batch element.
                  pl.BlockSpec((1, c_in, H + 4, W + 2),
                               lambda b, j: (b, 0, 0, 0))],
        out_specs=pl.BlockSpec((1, c_out, th, W), lambda b, j: (b, 0, j, 0)),
        scratch_shapes=[pltpu.VMEM((c_mid, th + 2, W + 2), jnp.float32)],
        compiler_params=_cparams("parallel", "parallel"),
    )(params["w1"].reshape(-1), params["b1"],
      params["w2"].reshape(-1), params["b2"], xpad)


# ----------------------------------------------------------------------------
# Resample2d warp + confidence map (W on lanes, lane-dense output)
# ----------------------------------------------------------------------------

def _warp_conf_kernel(im1_ref, c00_ref, c01_ref, c10_ref, c11_ref,
                      fx_ref, fy_ref, o_ref):
    # Bilinear mix of the 4 gathered corners (Resample2d) + confidence map.
    # All planes have W on the lane axis; the channel reduction is 2 VPU adds
    # over the small leading channel axis; the output is lane-dense (th, W).
    fx = fx_ref[0]
    fy = fy_ref[0]
    wx0 = 1.0 - fx
    wy0 = 1.0 - fy
    err = jnp.zeros_like(fx)
    for c in range(im1_ref.shape[1]):
        top = wx0 * c00_ref[0, c] + fx * c01_ref[0, c]
        bot = wx0 * c10_ref[0, c] + fx * c11_ref[0, c]
        d = im1_ref[0, c] - (wy0 * top + fy * bot)
        err = err + d * d
    o_ref[0] = (err < CONF_THRESH).astype(jnp.float32)


def resample_conf(im1, im2, flow):
    # Resample2d: warp im2 by flow (bilinear, clamped borders), then
    # conf = (sum_c (im1 - warped)^2 < 0.02).float()   -- all NCHW planes.
    B, C, H, W = im1.shape
    u = flow[:, 0]
    v = flow[:, 1]
    xs = jnp.arange(W, dtype=jnp.float32)[None, None, :]
    ys = jnp.arange(H, dtype=jnp.float32)[None, :, None]
    x = xs + u
    y = ys + v
    x0 = jnp.floor(x)
    y0 = jnp.floor(y)
    fx = x - x0
    fy = y - y0
    x0i = jnp.clip(x0.astype(jnp.int32), 0, W - 1)
    x1i = jnp.clip(x0i + 1, 0, W - 1)
    y0i = jnp.clip(y0.astype(jnp.int32), 0, H - 1)
    y1i = jnp.clip(y0i + 1, 0, H - 1)

    # TODO(synk): the data-dependent per-pixel bilinear gather stays in plain
    # JAX (no clean Pallas/TPU per-pixel gather); the lerp, channel reduction
    # and threshold run in the Pallas kernel with W on the lane axis.
    flat = im2.reshape(B, C, H * W)

    def gather(yi, xi):
        idx = (yi * W + xi).reshape(B, 1, H * W)
        idx = jnp.broadcast_to(idx, (B, C, H * W))
        return jnp.take_along_axis(flat, idx, axis=2).reshape(B, C, H, W)

    c00 = gather(y0i, x0i)
    c01 = gather(y0i, x1i)
    c10 = gather(y1i, x0i)
    c11 = gather(y1i, x1i)

    th = _pick_tile(H, 64)
    img = pl.BlockSpec((1, C, th, W), lambda b, j: (b, 0, j, 0))
    pln = pl.BlockSpec((1, th, W), lambda b, j: (b, j, 0))
    conf = pl.pallas_call(
        _warp_conf_kernel,
        out_shape=jax.ShapeDtypeStruct((B, H, W), jnp.float32),
        grid=(B, H // th),
        in_specs=[img, img, img, img, img, pln, pln],
        out_specs=pln,
        compiler_params=_cparams("parallel", "parallel"),
    )(im1, c00, c01, c10, c11, fx, fy)
    return conf[:, None]                                         # (B, 1, H, W)


# ----------------------------------------------------------------------------
# Module forward
# ----------------------------------------------------------------------------

def compute_flow_and_conf(im1, im2, params):
    B, C, h, w = im1.shape
    assert C == 3
    assert im1.shape == im2.shape
    if min(h, w) < 256:
        scale_factor = 256.0 / min(h, w)
        new_h, new_w = int(h * scale_factor), int(w * scale_factor)
        divisor = scale_factor
    else:
        new_h, new_w = (h // 64) * 64, (w // 64) * 64
        divisor = new_h / h
    im1p = resize_bilinear_nchw(im1, (new_h, new_w))
    im2p = resize_bilinear_nchw(im2, (new_h, new_w))
    flow = synthetic_flownet(im1p, im2p, params)                 # (B, 2, nh, nw)
    conf = resample_conf(im1p, im2p, flow)                       # (B, 1, nh, nw)
    flow_out = resize_bilinear_nchw(flow, (h, w), scale=1.0 / divisor)
    conf_out = resize_bilinear_nchw(conf, (h, w))
    return flow_out, conf_out


def flownet2_forward(input_A, input_B, params):
    # Mirrors FlowNet2.forward (4-D or 5-D inputs).
    if input_A.ndim == 5:
        b, n, c, h, w = input_A.shape
        fA = input_A.reshape(-1, c, h, w)
        fB = input_B.reshape(-1, c, h, w)
        flow, conf = compute_flow_and_conf(fA, fB, params)
        return flow.reshape(b, n, 2, h, w), conf.reshape(b, n, 1, h, w)
    assert input_A.ndim == 4
    return compute_flow_and_conf(input_A, input_B, params)


# ----------------------------------------------------------------------------
# Main
# ----------------------------------------------------------------------------

def _init_params(key):
    kw1, kw2 = jax.random.split(key, 2)
    return {
        "w1": 0.10 * jax.random.normal(kw1, (3, 3, 6, 8), jnp.float32),
        "b1": jnp.zeros((8,), jnp.float32),
        "w2": 0.05 * jax.random.normal(kw2, (3, 3, 8, 2), jnp.float32),
        "b2": jnp.zeros((2,), jnp.float32),
    }


if __name__ == "__main__":
    key = jax.random.PRNGKey(0)
    k_a, k_b, k_p = jax.random.split(key, 3)
    B, C, H, W = 2, 3, 16, 16
    input_A = jax.random.uniform(k_a, (B, C, H, W), jnp.float32)
    input_B = jax.random.uniform(k_b, (B, C, H, W), jnp.float32)
    params = _init_params(k_p)

    flow, conf = flownet2_forward(input_A, input_B, params)
    flow, conf = jax.block_until_ready((flow, conf))

    assert flow.shape == (B, 2, H, W), flow.shape
    assert conf.shape == (B, 1, H, W), conf.shape
    assert flow.dtype == jnp.float32 and conf.dtype == jnp.float32
    assert bool(jnp.all(jnp.isfinite(flow))) and bool(jnp.all(jnp.isfinite(conf)))
    print("KERNEL_OK")
</pallas_src>

<mosaic_0001>
module attributes {stable_mosaic.version = 11 : i64} {
  func.func @_resize_kernel(%arg0: i32, %arg1: i32, %arg2: memref<256x16xf32, #tpu.memory_space<vmem>>, %arg3: memref<1x1x16x16xf32, #tpu.memory_space<vmem>>, %arg4: memref<16x256xf32, #tpu.memory_space<vmem>>, %arg5: memref<1x1x256x256xf32, #tpu.memory_space<vmem>>, %arg6: memref<256x16xf32, #tpu.memory_space<vmem>>) attributes {dimension_semantics = [#tpu.dimension_semantics<parallel>, #tpu.dimension_semantics<parallel>], iteration_bounds = array<i64: 2, 3>, scalar_prefetch = 0 : i64, scratch_operands = 1 : i64, tpu.core_type = #tpu.core_type<tc>, window_params = [{pipeline_mode = #tpu.pipeline_mode<synchronous>, transform_indices = @transform_0, window_bounds = array<i64: 256, 16>}, {transform_indices = @transform_1, window_bounds = array<i64: 1, 1, 16, 16>}, {pipeline_mode = #tpu.pipeline_mode<synchronous>, transform_indices = @transform_2, window_bounds = array<i64: 16, 256>}, {transform_indices = @transform_3, window_bounds = array<i64: 1, 1, 256, 256>}]} {
    %c0 = arith.constant 0 : index
    %c0_0 = arith.constant 0 : index
    %0 = vector.load %arg2[%c0, %c0_0] : memref<256x16xf32, #tpu.memory_space<vmem>>, vector<256x16xf32>
    %c0_1 = arith.constant 0 : index
    %c0_2 = arith.constant 0 : index
    %c0_3 = arith.constant 0 : index
    %c0_4 = arith.constant 0 : index
    %1 = vector.load %arg3[%c0_1, %c0_2, %c0_3, %c0_4] : memref<1x1x16x16xf32, #tpu.memory_space<vmem>>, vector<1x1x16x16xf32>
    %2 = vector.shape_cast %1 : vector<1x1x16x16xf32> to vector<16x16xf32>
    %cst = arith.constant dense<0.000000e+00> : vector<256x16xf32>
    %3 = tpu.matmul %0, %2, %cst {dimension_numbers = #tpu.dot_dimension_numbers<[1], [0], [0], [1], [0, 0, 1, 1], [], []>} : vector<256x16xf32>, vector<16x16xf32>, vector<256x16xf32> -> vector<256x16xf32>
    %c0_5 = arith.constant 0 : index
    %c0_6 = arith.constant 0 : index
    %4 = vector.load %arg6[%c0_5, %c0_6] : memref<256x16xf32, #tpu.memory_space<vmem>>, vector<256x16xf32>
    tpu.vector_store %arg6[%c0_5, %c0_6], %3 {strides = array<i32>} : memref<256x16xf32, #tpu.memory_space<vmem>>, vector<256x16xf32>,
    %c0_7 = arith.constant 0 : index
    %c0_8 = arith.constant 0 : index
    %5 = vector.load %arg6[%c0_7, %c0_8] : memref<256x16xf32, #tpu.memory_space<vmem>>, vector<256x16xf32>
    %c0_9 = arith.constant 0 : index
    %c0_10 = arith.constant 0 : index
    %6 = vector.load %arg4[%c0_9, %c0_10] : memref<16x256xf32, #tpu.memory_space<vmem>>, vector<16x256xf32>
    %cst_11 = arith.constant dense<0.000000e+00> : vector<256x256xf32>
    %7 = tpu.matmul %5, %6, %cst_11 {dimension_numbers = #tpu.dot_dimension_numbers<[1], [0], [0], [1], [0, 0, 1, 1], [], []>} : vector<256x16xf32>, vector<16x256xf32>, vector<256x256xf32> -> vector<256x256xf32>
    %c0_12 = arith.constant 0 : index
    %c0_13 = arith.constant 0 : index
    %c0_14 = arith.constant 0 : index
    %c0_15 = arith.constant 0 : index
    %8 = vector.load %arg5[%c0_12, %c0_13, %c0_14, %c0_15] : memref<1x1x256x256xf32, #tpu.memory_space<vmem>>, vector<1x1x256x256xf32>
    %9 = vector.shape_cast %8 : vector<1x1x256x256xf32> to vector<256x256xf32>
    %10 = vector.shape_cast %7 : vector<256x256xf32> to vector<1x1x256x256xf32>
    tpu.vector_store %arg5[%c0_12, %c0_13, %c0_14, %c0_15], %10 {strides = array<i32>} : memref<1x1x256x256xf32, #tpu.memory_space<vmem>>, vector<1x1x256x256xf32>,
    return
  }
  func.func @transform_0(%arg0: i32, %arg1: i32) -> (i32, i32) {
    %c0_i32 = arith.constant 0 : i32
    %c0_i32_0 = arith.constant 0 : i32
    %c0_i32_1 = arith.constant 0 : i32
    return %c0_i32, %c0_i32_0 : i32, i32
  }
  func.func @transform_1(%arg0: i32, %arg1: i32) -> (i32, i32, i32, i32) {
    %c0_i32 = arith.constant 0 : i32
    %c0_i32_0 = arith.constant 0 : i32
    %c0_i32_1 = arith.constant 0 : i32
    return %arg0, %arg1, %c0_i32, %c0_i32_0 : i32, i32, i32, i32
  }
  func.func @transform_2(%arg0: i32, %arg1: i32) -> (i32, i32) {
    %c0_i32 = arith.constant 0 : i32
    %c0_i32_0 = arith.constant 0 : i32
    %c0_i32_1 = arith.constant 0 : i32
    return %c0_i32, %c0_i32_0 : i32, i32
  }
  func.func @transform_3(%arg0: i32, %arg1: i32) -> (i32, i32, i32, i32) {
    %c0_i32 = arith.constant 0 : i32
    %c0_i32_0 = arith.constant 0 : i32
    %c0_i32_1 = arith.constant 0 : i32
    return %arg0, %arg1, %c0_i32, %c0_i32_0 : i32, i32, i32, i32
  }
}

</mosaic_0001>

<bundles_post_ra>
// kernel: tpu_custom_call.1
= control target key start
LH: loop header
LB: loop body
LE: loop exit
PB: predicated region body
PF: predicated region fallthrough
CT: control target
= control target key end

     0   :  { %s1930_s0 = inlined_call_operand.vmem [shape: f32[256,16], index: 0, kind: input, shape index: {}]   ;;  %s1931_s1 = inlined_call_operand.hbm [shape: f32[2,3,16,16], index: 1, kind: input, shape index: {}]   ;;  %s1932_s2 = inlined_call_operand.hbm [shape: f32[16,256], index: 2, kind: input, shape index: {}]   ;;  %s1933_s3 = inlined_call_operand.hbm [shape: f32[2,3,256,256], index: 3, kind: output, shape index: {}]  }
   0x1   :  { %1940 = sst [smem:[#allocation17_spill]] %s1932_s2 }
   0x2   :  { %8 = vsyncpa [#allocation4], 0 }
   0x3   :  { %10 = vsyncpa [#allocation4 + $0x1], 0 }
   0x4   :  { %11 = vsyncpa [#allocation7], 0 }
   0x5   :  { %12 = vsyncpa [#allocation5], 0 }
   0x6   :  { %14 = vsyncpa [#allocation5 + $0x1], 0  ;;  %s1449_s12 = smov 0   ;;  %s1451_s13 = smov 0  }
   0x7   :  { %s1453_s14 = smov 0   ;;  %s1455_s15 = smov 0  }
   0x8   :  { %s1457_s16 = smov 0   ;;  %s1459_s17 = smov 0  }
   0x9   :  { %s1461_s18 = smov 0   ;;  %s1463_s19 = smov 0  }
   0xa LB: > { %1941 = sst [smem:[#allocation12_spill]] %s1392_s12  ;;  %s1042_s20 = sadd.s32 4294967295, %s1420_s19   ;;  %s1420_s19 = sphi %s1463_s19, %s20_s19   ;;  %s1416_s18 = sphi %s1461_s18, %s1963_s18   ;;  %s1412_s17 = sphi %s1459_s17, %s1958_s17   ;;  %s1408_s16 = sphi %s1457_s16, %s1962_s16   ;;  %s1404_s15 = sphi %s1455_s15, %s1957_s15   ;;  %s1400_s14 = sphi %s1453_s14, %s1961_s14   ;;  %s1396_s13 = sphi %s1451_s13, %s1960_s13   ;;  %s1392_s12 = sphi %s1449_s12, %s1959_s12  }
   0xb   : > { %1942 = sst [smem:[#allocation13_spill]] %s1412_s17  ;;  %s1043_s21 = sadd.s32 4294967294, %s1420_s19  }
   0xc   : > { %p75_p0 = scmp.ne.s32.totalorder %s1396_s13, %s1392_s12  ;;  %p1493_p1 = scmp.eq.s32.totalorder %s1042_s20, 0 }
   0xd   : > { %p1497_p2 = scmp.eq.s32.totalorder %s1042_s20, 5  ;;  %p128_p3 = scmp.eq.s32.totalorder %s1043_s21, 5 }
   0xe   : > { %p1503_p4 = por %p1493_p1, %p75_p0  ;;  %p1044_p5 = scmp.ge.s32.totalorder %s1420_s19, 1 }
   0xf   : > { %p1508_p6 = por %p128_p3, %p75_p0  ;;  %p135_p7 = scmp.lt.s32.totalorder %s1420_s19, 7 }
  0x10   : > { %s1948_s2 = sld [smem:[#allocation17_spill]]  ;;  %s1422_s30 = smov [#allocation6]  }
  0x11   : > { %s1946_s25 = scalar_select %p1508_p6, 1, 0 }
  0x12   : > { %p1516_p8 = pnand %p1044_p5, %p135_p7  ;;  %s151_s4 = sshll.u32 %s1422_s30, 4  ;;  %s152_s4 = int_to_ptr.vmem [resolvable:$true] %s151_s4 }
  0x13   : > { %1947 = sst [smem:[#allocation14_spill]] %s1946_s25  ;;  %s1423_s5 = smov 256  }
  0x14   : > { %p1171_p9 = pneg %p1516_p8  ;;  %s1424_s6 = smov 16  }
  0x15   : > { %s29_s7 = sadd.s32 1, %s1412_s17  ;;  %s32_s8 = sadd.s32 1, %s1416_s18 }
  0x16   : > { %s149_s28 = sshll.u32 %s1948_s2, 4  ;;  %p1172_p10 = pnand %p1171_p9, %p1493_p1  ;;  %s150_s28 = int_to_ptr.hbm [resolvable:$true] %s149_s28 }
  0x17   : > { %p30_p11 = scmp.ge.s32.totalorder %s29_s7, 3  ;;  %s62_s9 = sadd.s32 1, %s1400_s14 }
  0x18   : > { %1174 = dma.hbm_to_vmem [thread:$0]  (!%p1172_p10), %s150_s28, 512, %s152_s4, [#allocation7], %s1423_s5, %s1423_s5, %s1424_s6  }
  0x19   : > { %p69_p12 = scmp.ne.s32.totalorder %s1400_s14, %s1396_s13  ;;  %s1965_s7 = smov (%p30_p11, %s29_s7), 0 }
  0x1a   : > { %1950 = sst [smem:[#allocation15_spill]] %s1965_s7  ;;  %s1967_s8 = smov (!%p30_p11, %s32_s8), %s1416_s18 }
  0x1b   : > { %s58_s10 = ssub.s32 %s1412_s17, %s1965_s7  ;;  %p70_p13 = scmp.eq.s32.totalorder %s1420_s19, 0 }
  0x1c   : > { %p34_p0 = scmp.ge.s32.totalorder %s1967_s8, 2  ;;  %p1537_p3 = por %p1497_p2, %p69_p12 }
  0x1d   : > { %p1541_p5 = por %p70_p13, %p69_p12  ;;  %p1184_p7 = scmp.lt.s32.totalorder %s1420_s19, 6 }
  0x1e   : > { %s1951_s11 = scalar_select %p1537_p3, 1, 0 }
  0x1f   : > { %s1969_s8 = smov (%p34_p0, %s1967_s8), 0  ;;  %s165_s21 = sand.u32 1, %s1400_s14  }
  0x20   : > { %1952 = sst [smem:[#allocation16_spill]] %s1951_s11  ;;  %s1048_s26 = sshll.u32 %s1412_s17, 1 }
  0x21   : > { %s57_s27 = ssub.s32 %s1416_s18, %s1969_s8  ;;  %s1047_s30 = sshll.u32 %s165_s21, 4 }
  0x22   : > { %s59_s28 = sor.u32 %s58_s10, %s57_s27  ;;  %s1161_s23 = smul.u32 6, %s1416_s18 }
  0x23   : > { %p60_p9 = scmp.eq.s32.totalorder %s59_s28, 0  ;;  %s169_s4 = scalar_lea.vmem [#allocation3], %s1047_s30 }
  0x24   : > { %s179_s5 = sshll.u32 %s169_s4, 4  ;;  %s174_s2 = sadd.s32 %s1161_s23, %s1048_s26  ;;  %s180_s5 = int_to_ptr.vmem [resolvable:$true] %s179_s5 }
  0x25   : > { %s1554_s6 = scalar_select %p60_p9, %s1400_s14, %s62_s9  }
  0x26   : > { %s1049_s7 = sshll.u32 %s174_s2, 3  ;;  %p1176_p2 = pnand %p1184_p7, %p1541_p5 }
  0x27   : > { %s176_s11 = scalar_lea.hbm %s1931_s1, %s1049_s7  ;;  %s166_s10 = scalar_lea.sflag [#allocation4], %s165_s21 }
  0x28   : > { %s177_s17 = sshll.u32 %s176_s11, 4  ;;  %s1425_s27 = smov 128   ;;  %s178_s17 = int_to_ptr.hbm [resolvable:$true] %s177_s17 }
  0x29   : > { %s1426_s28 = smov 8   ;;  %191 = sbr.rel (%p1516_p8) target bundleno = 507 (0x1fb), region = 32 }
  0x2a   : > { %1178 = dma.hbm_to_vmem [thread:$0]  (!%p1176_p2), %s178_s17, 256, %s180_s5, %s166_s10, %s1425_s27, %s1425_s27, %s1426_s28  }
  0x2b   : > { %s1566_s9 = sand.u32 (!%p1516_p8), 1, %s1396_s13  }
  0x2c   : > { %s1051_s2 = sshll.u32 (!%p1516_p8), %s1566_s9, 4  ;;  %s194_s20 = scalar_lea.sflag (!%p1516_p8), [#allocation4], %s1566_s9 }
  0x2d   : > { %s197_s26 = scalar_lea.vmem (!%p1516_p8), [#allocation3], %s1051_s2 }
  0x2e   : > { %1379 = dma.done.wait (%p1503_p4), %s194_s20, 256  }
  0x2f   : > { %1381 = vsyncadd (%p1503_p4), %s194_s20, 4294967040 }
  0x30   : > { %1383 = dma.done.wait (%p1493_p1), [#allocation7], 512  }
  0x31   : > { %1385 = vsyncadd (%p1493_p1), [#allocation7], 4294966784  ;;  %v259_v0 = vld [vmem:[%s197_s26 + $0x8] sm:$0xff]  ;;  %v258_v1 = vld [vmem:[%s197_s26] sm:$0xff]  ;;  %vm260_vm0 = vcmask 130048   ;;  %s1053_s11 = sshll.u32 %s1566_s9, 9 }
  0x32   : > { %371 = vmatpush.msra.mxu0 %v259_v0  ;;  %1155 = vmatpush.msra.mxu3 %v259_v0  ;;  %v226_v2 = vld [vmem:[%s1930_s0] sm:$0xff]  ;;  %v227_v4 = vld [vmem:[%s1930_s0 + $0x8] sm:$0xff]  ;;  %v228_v6 = vld [vmem:[%s1930_s0 + $0x10] sm:$0xff]  ;;  %s1795_s21 = scalar_lea.vmem [#allocation8], %s1053_s11  ;;  %s1162_s30 = smul.u32 192, %s1408_s16 }
  0x33   : > { %v250_v3 = vld [vmem:[%s1930_s0 + $0xc0] sm:$0xff]  ;;  %v251_v5 = vld [vmem:[%s1930_s0 + $0xc8] sm:$0xff]  ;;  %v252_v7 = vld [vmem:[%s1930_s0 + $0xd0] sm:$0xff]  ;;  %s1151_s23 = sshll.u32 %s1404_s15, 6  ;;  %s939_s20 = sshll.u32 %s1795_s21, 4  ;;  %s940_s20 = int_to_ptr.vmem [resolvable:$true] %s939_s20 }
  0x34   : > { %372 = vmatpush.msra.mxu0 %v258_v1  ;;  %1156 = vmatpush.msra.mxu3 %v258_v1  ;;  %v229_v8 = vld [vmem:[%s1930_s0 + $0x18] sm:$0xff]  ;;  %v230_v10 = vld [vmem:[%s1930_s0 + $0x20] sm:$0xff]  ;;  %v231_v12 = vld [vmem:[%s1930_s0 + $0x28] sm:$0xff]  ;;  %s936_s4 = sadd.s32 %s1162_s30, %s1151_s23  ;;  %s925_s15 = scalar_lea.sflag [#allocation5], %s1566_s9 }
  0x35   : > { %1054 = vmatmul.msk.f32.vlgmr.msra.gmra.mxu0 %vm260_vm0, %v226_v2  ;;  %1078 = vmatmul.msk.f32.vlgmr.msra.gmra.mxu3 %vm260_vm0, %v250_v3  ;;  %v253_v9 = vld [vmem:[%s1930_s0 + $0xd8] sm:$0xff]  ;;  %v254_v11 = vld [vmem:[%s1930_s0 + $0xe0] sm:$0xff]  ;;  %v255_v13 = vld [vmem:[%s1930_s0 + $0xe8] sm:$0xff]  ;;  %s1152_s5 = sshll.u32 %s936_s4, 3  ;;  %s1338_s29 = scalar_lea.hbm %s1933_s3, 3072 }
  0x36   : > { %v232_v14 = vld [vmem:[%s1930_s0 + $0x30] sm:$0xff]  ;;  %v233_v16 = vld [vmem:[%s1930_s0 + $0x38] sm:$0xff]  ;;  %v234_v18 = vld [vmem:[%s1930_s0 + $0x40] sm:$0xff]  ;;  %s938_s2 = scalar_lea.hbm %s1933_s3, %s1152_s5 }
  0x37   : > { %v256_v15 = vld [vmem:[%s1930_s0 + $0xf0] sm:$0xff]  ;;  %v257_v17 = vld [vmem:[%s1930_s0 + $0xf8] sm:$0xff]  ;;  %v235_v19 = vld [vmem:[%s1930_s0 + $0x48] sm:$0xff]  ;;  %s941_s16 = sshll.u32 %s938_s2, 4  ;;  %s942_s16 = int_to_ptr.hbm [resolvable:$true] %s941_s16 }
  0x38   : > { %v236_v20 = vld [vmem:[%s1930_s0 + $0x50] sm:$0xff]  ;;  %v237_v21 = vld [vmem:[%s1930_s0 + $0x58] sm:$0xff]  ;;  %v238_v22 = vld [vmem:[%s1930_s0 + $0x60] sm:$0xff]  ;;  %s1332_s26 = sshra.s32 %s942_s16, 4  ;;  %s1333_s26 = int_to_ptr.hbm [resolvable:$true] %s1332_s26 }
  0x39   : > { %v536_v23 = vld [vmem:[#allocation6 + $0x10] sm:$0xff]  ;;  %v537_v24 = vld [vmem:[#allocation6 + $0x18] sm:$0xff]  ;;  %v534_v25 = vld [vmem:[#allocation6] sm:$0xff]  ;;  %s1334_s12 = scalar_lea.hbm %s1333_s26, 512  ;;  %p1339_p10 = scmp.lt.s32.totalorder %s1333_s26, %s1933_s3 }
  0x3a   : > { %648 = vmatpush.msra.mxu1 %v536_v23  ;;  %761 = vmatpush.msra.mxu2 %v537_v24  ;;  %v535_v26 = vld [vmem:[#allocation6 + $0x8] sm:$0xff]  ;;  %v240_v28 = vld [vmem:[%s1930_s0 + $0x70] sm:$0xff]  ;;  %v241_v29 = vld [vmem:[%s1930_s0 + $0x78] sm:$0xff]  ;;  %p1335_p1 = scmp.ne.s32.totalorder %s1333_s26, %s1334_s12  ;;  %p1340_p11 = scmp.lt.s32.totalorder %s1338_s29, %s1334_s12 }
  0x3b   : > { %1157 = vmatpush.msrb.mxu3 %v536_v23  ;;  %v239_v27 = vld [vmem:[%s1930_s0 + $0x68] sm:$0xff]  ;;  %v242_v31 = vld [vmem:[%s1930_s0 + $0x80] sm:$0xff]  ;;  %v244_v40 = vld [vmem:[%s1930_s0 + $0x90] sm:$0xff] }
  0x3c   : > { %649 = vmatpush.msra.mxu1 %v534_v25  ;;  %762 = vmatpush.msra.mxu2 %v535_v26  ;;  %v243_v35 = vld [vmem:[%s1930_s0 + $0x88] sm:$0xff]  ;;  %v245_v45 = vld [vmem:[%s1930_s0 + $0x98] sm:$0xff]  ;;  %v246_v50 = vld [vmem:[%s1930_s0 + $0xa0] sm:$0xff]  ;;  %p1336_p4 = pnand %p1335_p1, %p1537_p3  ;;  %p1341_p12 = por %p1340_p11, %p1339_p10 }
  0x3d   : > { %1055 = vmatmul.msk.f32.gmra.mxu0 %vm260_vm0, %v227_v4  ;;  %1079 = vmatmul.msk.f32.gmra.mxu3 %vm260_vm0, %v251_v5  ;;  %v247_v55 = vld [vmem:[%s1930_s0 + $0xa8] sm:$0xff]  ;;  %v248_v60 = vld [vmem:[%s1930_s0 + $0xb0] sm:$0xff]  ;;  %v249_v1 = vld [vmem:[%s1930_s0 + $0xb8] sm:$0xff] }
  0x3e   : > { %1158 = vmatpush.msrb.mxu3 %v534_v25  ;;  %p1337_p8 = pneg %p1336_p4 }
  0x40   : > { %1159 = vmatpush.msra.mxu3 %v537_v24  ;;  %p1342_p13 = pnand %p1341_p12, %p1337_p8 }
  0x42   : > { %1160 = vmatpush.msra.mxu3 %v535_v26 }
  0x45   : > { %1056 = vmatmul.msk.f32.gmra.mxu0 %vm260_vm0, %v228_v6  ;;  %1080 = vmatmul.msk.f32.gmra.mxu3 %vm260_vm0, %v252_v7 }
  0x4d   : > { %1057 = vmatmul.msk.f32.gmra.mxu0 %vm260_vm0, %v229_v8  ;;  %1081 = vmatmul.msk.f32.gmra.mxu3 %vm260_vm0, %v253_v9 }
  0x55   : > { %1058 = vmatmul.msk.f32.gmra.mxu0 %vm260_vm0, %v230_v10  ;;  %1082 = vmatmul.msk.f32.gmra.mxu3 %vm260_vm0, %v254_v11 }
  0x5d   : > { %1059 = vmatmul.msk.f32.gmra.mxu0 %vm260_vm0, %v231_v12  ;;  %1083 = vmatmul.msk.f32.gmra.mxu3 %vm260_vm0, %v255_v13 }
  0x65   : > { %1060 = vmatmul.msk.f32.gmra.mxu0 %vm260_vm0, %v232_v14  ;;  %1084 = vmatmul.msk.f32.gmra.mxu3 %vm260_vm0, %v256_v15 }
  0x6d   : > { %1061 = vmatmul.msk.f32.gmra.mxu0 %vm260_vm0, %v233_v16  ;;  %1085 = vmatmul.msk.f32.gmra.mxu3 %vm260_vm0, %v257_v17 }
  0x75   : > { %1062 = vmatmul.msk.f32.gmra.mxu0 %vm260_vm0, %v234_v18 }
  0x7d   : > { %1063 = vmatmul.msk.f32.gmra.mxu0 %vm260_vm0, %v235_v19 }
  0x85   : > { %1064 = vmatmul.msk.f32.gmra.mxu0 %vm260_vm0, %v236_v20 }
  0x8d   : > { %1065 = vmatmul.msk.f32.gmra.mxu0 %vm260_vm0, %v237_v21 }
  0x95   : > { %1066 = vmatmul.msk.f32.gmra.mxu0 %vm260_vm0, %v238_v22 }
  0x9d   : > { %1067 = vmatmul.msk.f32.gmra.mxu0 %vm260_vm0, %v239_v27 }
  0xa5   : > { %1068 = vmatmul.msk.f32.gmra.mxu0 %vm260_vm0, %v240_v28 }
  0xad   : > { %1069 = vmatmul.msk.f32.gmra.mxu0 %vm260_vm0, %v241_v29 }
  0xb2   : > { %v374_v30 = vpop.f32.mrf.mxu0 }
  0xb3   : > { %470 = vst.msk [vmem:[#allocation2] sm:$0xff] %vm260_vm0, %v374_v30 }
  0xb5   : > { %1070 = vmatmul.msk.f32.gmra.mxu0 %vm260_vm0, %v242_v31 }
  0xb8   : > { %v446_v32 = vpop.f32.mrf.mxu3 }
  0xb9   : > { %494 = vst.msk [vmem:[#allocation2 + $0xc0] sm:$0xff] %vm260_vm0, %v446_v32 }
  0xba   : > { %v377_v33 = vpop.f32.mrf.mxu0  ;;  %v502_v34 = vld [vmem:[#allocation2] sm:$0xff] }
  0xbb   : > { %471 = vst.msk [vmem:[#allocation2 + $0x8] sm:$0xff] %vm260_vm0, %v377_v33  ;;  %1086 = vmatmul.msk.f32.vlgmr.msra.gmra.mxu1 %vm260_vm0, %v502_v34  ;;  %1118 = vmatmul.msk.f32.vlgmr.msra.gmra.mxu2 %vm260_vm0, %v502_v34 }
  0xbd   : > { %1071 = vmatmul.msk.f32.gmra.mxu0 %vm260_vm0, %v243_v35 }
  0xc0   : > { %v449_v36 = vpop.f32.mrf.mxu3  ;;  %v1687_v37 = vld [vmem:[#allocation2 + $0xc0] sm:$0xff] }
  0xc1   : > { %495 = vst.msk [vmem:[#allocation2 + $0xc8] sm:$0xff] %vm260_vm0, %v449_v36  ;;  %1110 = vmatmul.msk.f32.vlgmr.msrb.gmra.mxu3 %vm260_vm0, %v1687_v37 }
  0xc2   : > { %v380_v38 = vpop.f32.mrf.mxu0  ;;  %v503_v39 = vld [vmem:[#allocation2 + $0x8] sm:$0xff] }
  0xc3   : > { %472 = vst.msk [vmem:[#allocation2 + $0x10] sm:$0xff] %vm260_vm0, %v380_v38  ;;  %1087 = vmatmul.msk.f32.gmra.mxu1 %vm260_vm0, %v503_v39  ;;  %1119 = vmatmul.msk.f32.gmra.mxu2 %vm260_vm0, %v503_v39 }
  0xc5   : > { %1072 = vmatmul.msk.f32.gmra.mxu0 %vm260_vm0, %v244_v40 }
  0xc8   : > { %v452_v41 = vpop.f32.mrf.mxu3  ;;  %v1699_v42 = vld [vmem:[#allocation2 + $0xc8] sm:$0xff] }
  0xc9   : > { %496 = vst.msk [vmem:[#allocation2 + $0xd0] sm:$0xff] %vm260_vm0, %v452_v41  ;;  %1111 = vmatmul.msk.f32.gmra.mxu3 %vm260_vm0, %v1699_v42 }
  0xca   : > { %v383_v43 = vpop.f32.mrf.mxu0  ;;  %v504_v44 = vld [vmem:[#allocation2 + $0x10] sm:$0xff] }
  0xcb   : > { %473 = vst.msk [vmem:[#allocation2 + $0x18] sm:$0xff] %vm260_vm0, %v383_v43  ;;  %1088 = vmatmul.msk.f32.gmra.mxu1 %vm260_vm0, %v504_v44  ;;  %1120 = vmatmul.msk.f32.gmra.mxu2 %vm260_vm0, %v504_v44 }
  0xcd   : > { %1073 = vmatmul.msk.f32.gmra.mxu0 %vm260_vm0, %v245_v45 }
  0xd0   : > { %v455_v46 = vpop.f32.mrf.mxu3  ;;  %v1711_v47 = vld [vmem:[#allocation2 + $0xd0] sm:$0xff] }
  0xd1   : > { %497 = vst.msk [vmem:[#allocation2 + $0xd8] sm:$0xff] %vm260_vm0, %v455_v46  ;;  %1112 = vmatmul.msk.f32.gmra.mxu3 %vm260_vm0, %v1711_v47 }
  0xd2   : > { %v386_v48 = vpop.f32.mrf.mxu0  ;;  %v505_v49 = vld [vmem:[#allocation2 + $0x18] sm:$0xff] }
  0xd3   : > { %474 = vst.msk [vmem:[#allocation2 + $0x20] sm:$0xff] %vm260_vm0, %v386_v48  ;;  %1089 = vmatmul.msk.f32.gmra.mxu1 %vm260_vm0, %v505_v49  ;;  %1121 = vmatmul.msk.f32.gmra.mxu2 %vm260_vm0, %v505_v49 }
  0xd5   : > { %1074 = vmatmul.msk.f32.gmra.mxu0 %vm260_vm0, %v246_v50 }
  0xd8   : > { %v458_v51 = vpop.f32.mrf.mxu3  ;;  %v1723_v52 = vld [vmem:[#allocation2 + $0xd8] sm:$0xff] }
  0xd9   : > { %498 = vst.msk [vmem:[#allocation2 + $0xe0] sm:$0xff] %vm260_vm0, %v458_v51  ;;  %1113 = vmatmul.msk.f32.gmra.mxu3 %vm260_vm0, %v1723_v52 }
  0xda   : > { %v389_v53 = vpop.f32.mrf.mxu0  ;;  %v506_v54 = vld [vmem:[#allocation2 + $0x20] sm:$0xff] }
  0xdb   : > { %475 = vst.msk [vmem:[#allocation2 + $0x28] sm:$0xff] %vm260_vm0, %v389_v53  ;;  %1090 = vmatmul.msk.f32.gmra.mxu1 %vm260_vm0, %v506_v54  ;;  %1122 = vmatmul.msk.f32.gmra.mxu2 %vm260_vm0, %v506_v54 }
  0xdd   : > { %1075 = vmatmul.msk.f32.gmra.mxu0 %vm260_vm0, %v247_v55 }
  0xe0   : > { %v461_v56 = vpop.f32.mrf.mxu3  ;;  %v530_v57 = vld [vmem:[#allocation2 + $0xe0] sm:$0xff] }
  0xe1   : > { %499 = vst.msk [vmem:[#allocation2 + $0xe8] sm:$0xff] %vm260_vm0, %v461_v56  ;;  %1114 = vmatmul.msk.f32.gmra.mxu3 %vm260_vm0, %v530_v57 }
  0xe2   : > { %v392_v58 = vpop.f32.mrf.mxu0  ;;  %v507_v59 = vld [vmem:[#allocation2 + $0x28] sm:$0xff] }
  0xe3   : > { %476 = vst.msk [vmem:[#allocation2 + $0x30] sm:$0xff] %vm260_vm0, %v392_v58  ;;  %1091 = vmatmul.msk.f32.gmra.mxu1 %vm260_vm0, %v507_v59  ;;  %1123 = vmatmul.msk.f32.gmra.mxu2 %vm260_vm0, %v507_v59 }
  0xe5   : > { %1076 = vmatmul.msk.f32.gmra.mxu0 %vm260_vm0, %v248_v60 }
  0xe8   : > { %v464_v61 = vpop.f32.mrf.mxu3  ;;  %v531_v62 = vld [vmem:[#allocation2 + $0xe8] sm:$0xff] }
  0xe9   : > { %500 = vst.msk [vmem:[#allocation2 + $0xf0] sm:$0xff] %vm260_vm0, %v464_v61  ;;  %1115 = vmatmul.msk.f32.gmra.mxu3 %vm260_vm0, %v531_v62 }
  0xea   : > { %v395_v63 = vpop.f32.mrf.mxu0  ;;  %v508_v0 = vld [vmem:[#allocation2 + $0x30] sm:$0xff] }
  0xeb   : > { %477 = vst.msk [vmem:[#allocation2 + $0x38] sm:$0xff] %vm260_vm0, %v395_v63  ;;  %1092 = vmatmul.msk.f32.gmra.mxu1 %vm260_vm0, %v508_v0  ;;  %1124 = vmatmul.msk.f32.gmra.mxu2 %vm260_vm0, %v508_v0 }
  0xed   : > { %1077 = vmatmul.msk.f32.gmra.mxu0 %vm260_vm0, %v249_v1 }
  0xf0   : > { %v467_v2 = vpop.f32.mrf.mxu3  ;;  %v532_v3 = vld [vmem:[#allocation2 + $0xf0] sm:$0xff] }
  0xf1   : > { %501 = vst.msk [vmem:[#allocation2 + $0xf8] sm:$0xff] %vm260_vm0, %v467_v2  ;;  %1116 = vmatmul.msk.f32.gmra.mxu3 %vm260_vm0, %v532_v3 }
  0xf2   : > { %v398_v4 = vpop.f32.mrf.mxu0  ;;  %v509_v5 = vld [vmem:[#allocation2 + $0x38] sm:$0xff] }
  0xf3   : > { %478 = vst.msk [vmem:[#allocation2 + $0x40] sm:$0xff] %vm260_vm0, %v398_v4  ;;  %1093 = vmatmul.msk.f32.gmra.mxu1 %vm260_vm0, %v509_v5  ;;  %1125 = vmatmul.msk.f32.gmra.mxu2 %vm260_vm0, %v509_v5 }
  0xf8   : > { %v533_v6 = vld [vmem:[#allocation2 + $0xf8] sm:$0xff] }
  0xf9   : > { %1117 = vmatmul.msk.f32.gmra.mxu3 %vm260_vm0, %v533_v6 }
  0xfa   : > { %v401_v7 = vpop.f32.mrf.mxu0  ;;  %v510_v8 = vld [vmem:[#allocation2 + $0x40] sm:$0xff] }
  0xfb   : > { %479 = vst.msk [vmem:[#allocation2 + $0x48] sm:$0xff] %vm260_vm0, %v401_v7  ;;  %1094 = vmatmul.msk.f32.gmra.mxu1 %vm260_vm0, %v510_v8  ;;  %1126 = vmatmul.msk.f32.gmra.mxu2 %vm260_vm0, %v510_v8 }
 0x101   : > { %1142 = vmatmul.msk.f32.vlgmr.msra.gmra.mxu3 %vm260_vm0, %v1687_v37 }
 0x102   : > { %v404_v9 = vpop.f32.mrf.mxu0  ;;  %v511_v10 = vld [vmem:[#allocation2 + $0x48] sm:$0xff] }
 0x103   : > { %480 = vst.msk [vmem:[#allocation2 + $0x50] sm:$0xff] %vm260_vm0, %v404_v9  ;;  %1095 = vmatmul.msk.f32.gmra.mxu1 %vm260_vm0, %v511_v10  ;;  %1127 = vmatmul.msk.f32.gmra.mxu2 %vm260_vm0, %v511_v10 }
 0x109   : > { %1143 = vmatmul.msk.f32.gmra.mxu3 %vm260_vm0, %v1699_v42 }
 0x10a   : > { %v407_v11 = vpop.f32.mrf.mxu0  ;;  %v512_v12 = vld [vmem:[#allocation2 + $0x50] sm:$0xff] }
 0x10b   : > { %481 = vst.msk [vmem:[#allocation2 + $0x58] sm:$0xff] %vm260_vm0, %v407_v11  ;;  %1096 = vmatmul.msk.f32.gmra.mxu1 %vm260_vm0, %v512_v12  ;;  %1128 = vmatmul.msk.f32.gmra.mxu2 %vm260_vm0, %v512_v12 }
 0x111   : > { %1144 = vmatmul.msk.f32.gmra.mxu3 %vm260_vm0, %v1711_v47 }
 0x112   : > { %v410_v13 = vpop.f32.mrf.mxu0  ;;  %v513_v14 = vld [vmem:[#allocation2 + $0x58] sm:$0xff] }
 0x113   : > { %482 = vst.msk [vmem:[#allocation2 + $0x60] sm:$0xff] %vm260_vm0, %v410_v13  ;;  %1097 = vmatmul.msk.f32.gmra.mxu1 %vm260_vm0, %v513_v14  ;;  %1129 = vmatmul.msk.f32.gmra.mxu2 %vm260_vm0, %v513_v14 }
 0x119   : > { %1145 = vmatmul.msk.f32.gmra.mxu3 %vm260_vm0, %v1723_v52 }
 0x11a   : > { %v413_v15 = vpop.f32.mrf.mxu0  ;;  %v514_v16 = vld [vmem:[#allocation2 + $0x60] sm:$0xff] }
 0x11b   : > { %483 = vst.msk [vmem:[#allocation2 + $0x68] sm:$0xff] %vm260_vm0, %v413_v15  ;;  %1098 = vmatmul.msk.f32.gmra.mxu1 %vm260_vm0, %v514_v16  ;;  %1130 = vmatmul.msk.f32.gmra.mxu2 %vm260_vm0, %v514_v16 }
 0x121   : > { %1146 = vmatmul.msk.f32.gmra.mxu3 %vm260_vm0, %v530_v57 }
 0x122   : > { %v416_v17 = vpop.f32.mrf.mxu0  ;;  %v515_v18 = vld [vmem:[#allocation2 + $0x68] sm:$0xff] }
 0x123   : > { %484 = vst.msk [vmem:[#allocation2 + $0x70] sm:$0xff] %vm260_vm0, %v416_v17  ;;  %1099 = vmatmul.msk.f32.gmra.mxu1 %vm260_vm0, %v515_v18  ;;  %1131 = vmatmul.msk.f32.gmra.mxu2 %vm260_vm0, %v515_v18 }
 0x129   : > { %1147 = vmatmul.msk.f32.gmra.mxu3 %vm260_vm0, %v531_v62 }
 0x12a   : > { %v419_v19 = vpop.f32.mrf.mxu0  ;;  %v516_v20 = vld [vmem:[#allocation2 + $0x70] sm:$0xff] }
 0x12b   : > { %485 = vst.msk [vmem:[#allocation2 + $0x78] sm:$0xff] %vm260_vm0, %v419_v19  ;;  %1100 = vmatmul.msk.f32.gmra.mxu1 %vm260_vm0, %v516_v20  ;;  %1132 = vmatmul.msk.f32.gmra.mxu2 %vm260_vm0, %v516_v20 }
 0x131   : > { %1148 = vmatmul.msk.f32.gmra.mxu3 %vm260_vm0, %v532_v3 }
 0x132   : > { %v422_v21 = vpop.f32.mrf.mxu0  ;;  %v517_v22 = vld [vmem:[#allocation2 + $0x78] sm:$0xff] }
 0x133   : > { %486 = vst.msk [vmem:[#allocation2 + $0x80] sm:$0xff] %vm260_vm0, %v422_v21  ;;  %1101 = vmatmul.msk.f32.gmra.mxu1 %vm260_vm0, %v517_v22  ;;  %1133 = vmatmul.msk.f32.gmra.mxu2 %vm260_vm0, %v517_v22 }
 0x138   : > { %v651_v23 = vpop.f32.mrf.mxu1 }
 0x139   : > { %860 = vst [vmem:[%s1795_s21] sm:$0xff] %v651_v23  ;;  %1149 = vmatmul.msk.f32.gmra.mxu3 %vm260_vm0, %v533_v6 }
 0x13a   : > { %v425_v24 = vpop.f32.mrf.mxu0  ;;  %v518_v25 = vld [vmem:[#allocation2 + $0x80] sm:$0xff] }
 0x13b   : > { %487 = vst.msk [vmem:[#allocation2 + $0x88] sm:$0xff] %vm260_vm0, %v425_v24  ;;  %1102 = vmatmul.msk.f32.gmra.mxu1 %vm260_vm0, %v518_v25  ;;  %1134 = vmatmul.msk.f32.gmra.mxu2 %vm260_vm0, %v518_v25 }
 0x13e   : > { %v764_v26 = vpop.f32.mrf.mxu2 }
 0x13f   : > { %861 = vst [vmem:[%s1795_s21 + $0x8] sm:$0xff] %v764_v26 }
 0x140   : > { %v654_v27 = vpop.f32.mrf.mxu1 }
 0x141   : > { %862 = vst [vmem:[%s1795_s21 + $0x10] sm:$0xff] %v654_v27 }
 0x142   : > { %v428_v28 = vpop.f32.mrf.mxu0  ;;  %v519_v29 = vld [vmem:[#allocation2 + $0x88] sm:$0xff] }
 0x143   : > { %488 = vst.msk [vmem:[#allocation2 + $0x90] sm:$0xff] %vm260_vm0, %v428_v28  ;;  %1103 = vmatmul.msk.f32.gmra.mxu1 %vm260_vm0, %v519_v29  ;;  %1135 = vmatmul.msk.f32.gmra.mxu2 %vm260_vm0, %v519_v29 }
 0x144   : > { %v723_v30 = vpop.f32.mrf.mxu3 }
 0x145   : > { %908 = vst [vmem:[%s1795_s21 + $0x180] sm:$0xff] %v723_v30 }
 0x146   : > { %v767_v31 = vpop.f32.mrf.mxu2 }
 0x147   : > { %863 = vst [vmem:[%s1795_s21 + $0x18] sm:$0xff] %v767_v31 }
 0x148   : > { %v657_v32 = vpop.f32.mrf.mxu1 }
 0x149   : > { %864 = vst [vmem:[%s1795_s21 + $0x20] sm:$0xff] %v657_v32 }
 0x14a   : > { %v431_v33 = vpop.f32.mrf.mxu0  ;;  %v520_v34 = vld [vmem:[#allocation2 + $0x90] sm:$0xff] }
 0x14b   : > { %489 = vst.msk [vmem:[#allocation2 + $0x98] sm:$0xff] %vm260_vm0, %v431_v33  ;;  %1104 = vmatmul.msk.f32.gmra.mxu1 %vm260_vm0, %v520_v34  ;;  %1136 = vmatmul.msk.f32.gmra.mxu2 %vm260_vm0, %v520_v34 }
 0x14c   : > { %v726_v35 = vpop.f32.mrf.mxu3 }
 0x14d   : > { %910 = vst [vmem:[%s1795_s21 + $0x190] sm:$0xff] %v726_v35 }
 0x14e   : > { %v770_v36 = vpop.f32.mrf.mxu2 }
 0x14f   : > { %865 = vst [vmem:[%s1795_s21 + $0x28] sm:$0xff] %v770_v36 }
 0x150   : > { %v660_v37 = vpop.f32.mrf.mxu1 }
 0x151   : > { %866 = vst [vmem:[%s1795_s21 + $0x30] sm:$0xff] %v660_v37 }
 0x152   : > { %v434_v38 = vpop.f32.mrf.mxu0  ;;  %v521_v39 = vld [vmem:[#allocation2 + $0x98] sm:$0xff] }
 0x153   : > { %490 = vst.msk [vmem:[#allocation2 + $0xa0] sm:$0xff] %vm260_vm0, %v434_v38  ;;  %1105 = vmatmul.msk.f32.gmra.mxu1 %vm260_vm0, %v521_v39  ;;  %1137 = vmatmul.msk.f32.gmra.mxu2 %vm260_vm0, %v521_v39 }
 0x154   : > { %v729_v40 = vpop.f32.mrf.mxu3 }
 0x155   : > { %912 = vst [vmem:[%s1795_s21 + $0x1a0] sm:$0xff] %v729_v40 }
 0x156   : > { %v773_v41 = vpop.f32.mrf.mxu2 }
 0x157   : > { %867 = vst [vmem:[%s1795_s21 + $0x38] sm:$0xff] %v773_v41 }
 0x158   : > { %v663_v42 = vpop.f32.mrf.mxu1 }
 0x159   : > { %868 = vst [vmem:[%s1795_s21 + $0x40] sm:$0xff] %v663_v42 }
 0x15a   : > { %v437_v43 = vpop.f32.mrf.mxu0  ;;  %v522_v44 = vld [vmem:[#allocation2 + $0xa0] sm:$0xff] }
 0x15b   : > { %491 = vst.msk [vmem:[#allocation2 + $0xa8] sm:$0xff] %vm260_vm0, %v437_v43  ;;  %1106 = vmatmul.msk.f32.gmra.mxu1 %vm260_vm0, %v522_v44  ;;  %1138 = vmatmul.msk.f32.gmra.mxu2 %vm260_vm0, %v522_v44 }
 0x15c   : > { %v732_v45 = vpop.f32.mrf.mxu3 }
 0x15d   : > { %914 = vst [vmem:[%s1795_s21 + $0x1b0] sm:$0xff] %v732_v45 }
 0x15e   : > { %v776_v46 = vpop.f32.mrf.mxu2 }
 0x15f   : > { %869 = vst [vmem:[%s1795_s21 + $0x48] sm:$0xff] %v776_v46 }
 0x160   : > { %v666_v47 = vpop.f32.mrf.mxu1 }
 0x161   : > { %870 = vst [vmem:[%s1795_s21 + $0x50] sm:$0xff] %v666_v47 }
 0x162   : > { %v440_v48 = vpop.f32.mrf.mxu0  ;;  %v523_v49 = vld [vmem:[#allocation2 + $0xa8] sm:$0xff] }
 0x163   : > { %492 = vst.msk [vmem:[#allocation2 + $0xb0] sm:$0xff] %vm260_vm0, %v440_v48  ;;  %1107 = vmatmul.msk.f32.gmra.mxu1 %vm260_vm0, %v523_v49  ;;  %1139 = vmatmul.msk.f32.gmra.mxu2 %vm260_vm0, %v523_v49 }
 0x164   : > { %v735_v50 = vpop.f32.mrf.mxu3 }
 0x165   : > { %916 = vst [vmem:[%s1795_s21 + $0x1c0] sm:$0xff] %v735_v50 }
 0x166   : > { %v779_v51 = vpop.f32.mrf.mxu2 }
 0x167   : > { %871 = vst [vmem:[%s1795_s21 + $0x58] sm:$0xff] %v779_v51 }
 0x168   : > { %v669_v52 = vpop.f32.mrf.mxu1 }
 0x169   : > { %872 = vst [vmem:[%s1795_s21 + $0x60] sm:$0xff] %v669_v52 }
 0x16a   : > { %v443_v53 = vpop.f32.mrf.mxu0  ;;  %v524_v54 = vld [vmem:[#allocation2 + $0xb0] sm:$0xff] }
 0x16b   : > { %493 = vst.msk [vmem:[#allocation2 + $0xb8] sm:$0xff] %vm260_vm0, %v443_v53  ;;  %1108 = vmatmul.msk.f32.gmra.mxu1 %vm260_vm0, %v524_v54  ;;  %1140 = vmatmul.msk.f32.gmra.mxu2 %vm260_vm0, %v524_v54 }
 0x16c   : > { %v738_v55 = vpop.f32.mrf.mxu3 }
 0x16d   : > { %918 = vst [vmem:[%s1795_s21 + $0x1d0] sm:$0xff] %v738_v55 }
 0x16e   : > { %v782_v56 = vpop.f32.mrf.mxu2 }
 0x16f   : > { %873 = vst [vmem:[%s1795_s21 + $0x68] sm:$0xff] %v782_v56 }
 0x170   : > { %v672_v57 = vpop.f32.mrf.mxu1 }
 0x171   : > { %874 = vst [vmem:[%s1795_s21 + $0x70] sm:$0xff] %v672_v57 }
 0x172   : > { %v525_v58 = vld [vmem:[#allocation2 + $0xb8] sm:$0xff] }
 0x173   : > { %1109 = vmatmul.msk.f32.gmra.mxu1 %vm260_vm0, %v525_v58  ;;  %1141 = vmatmul.msk.f32.gmra.mxu2 %vm260_vm0, %v525_v58 }
 0x174   : > { %v741_v59 = vpop.f32.mrf.mxu3 }
 0x175   : > { %920 = vst [vmem:[%s1795_s21 + $0x1e0] sm:$0xff] %v741_v59 }
 0x176   : > { %v785_v60 = vpop.f32.mrf.mxu2 }
 0x177   : > { %875 = vst [vmem:[%s1795_s21 + $0x78] sm:$0xff] %v785_v60 }
 0x178   : > { %v675_v61 = vpop.f32.mrf.mxu1 }
 0x179   : > { %876 = vst [vmem:[%s1795_s21 + $0x80] sm:$0xff] %v675_v61 }
 0x17c   : > { %v744_v62 = vpop.f32.mrf.mxu3 }
 0x17d   : > { %922 = vst [vmem:[%s1795_s21 + $0x1f0] sm:$0xff] %v744_v62 }
 0x17e   : > { %v788_v63 = vpop.f32.mrf.mxu2 }
 0x17f   : > { %877 = vst [vmem:[%s1795_s21 + $0x88] sm:$0xff] %v788_v63 }
 0x180   : > { %v678_v0 = vpop.f32.mrf.mxu1 }
 0x181   : > { %878 = vst [vmem:[%s1795_s21 + $0x90] sm:$0xff] %v678_v0 }
 0x184   : > { %v836_v1 = vpop.f32.mrf.mxu3 }
 0x185   : > { %909 = vst [vmem:[%s1795_s21 + $0x188] sm:$0xff] %v836_v1 }
 0x186   : > { %v791_v2 = vpop.f32.mrf.mxu2 }
 0x187   : > { %879 = vst [vmem:[%s1795_s21 + $0x98] sm:$0xff] %v791_v2 }
 0x188   : > { %v681_v3 = vpop.f32.mrf.mxu1 }
 0x189   : > { %880 = vst [vmem:[%s1795_s21 + $0xa0] sm:$0xff] %v681_v3 }
 0x18c   : > { %v839_v4 = vpop.f32.mrf.mxu3 }
 0x18d   : > { %911 = vst [vmem:[%s1795_s21 + $0x198] sm:$0xff] %v839_v4 }
 0x18e   : > { %v794_v5 = vpop.f32.mrf.mxu2 }
 0x18f   : > { %881 = vst [vmem:[%s1795_s21 + $0xa8] sm:$0xff] %v794_v5 }
 0x190   : > { %v684_v6 = vpop.f32.mrf.mxu1 }
 0x191   : > { %882 = vst [vmem:[%s1795_s21 + $0xb0] sm:$0xff] %v684_v6 }
 0x194   : > { %v842_v7 = vpop.f32.mrf.mxu3 }
 0x195   : > { %913 = vst [vmem:[%s1795_s21 + $0x1a8] sm:$0xff] %v842_v7 }
 0x196   : > { %v797_v8 = vpop.f32.mrf.mxu2 }
 0x197   : > { %883 = vst [vmem:[%s1795_s21 + $0xb8] sm:$0xff] %v797_v8 }
 0x198   : > { %v687_v9 = vpop.f32.mrf.mxu1 }
 0x199   : > { %884 = vst [vmem:[%s1795_s21 + $0xc0] sm:$0xff] %v687_v9 }
 0x19c   : > { %v845_v10 = vpop.f32.mrf.mxu3 }
 0x19d   : > { %915 = vst [vmem:[%s1795_s21 + $0x1b8] sm:$0xff] %v845_v10 }
 0x19e   : > { %v800_v11 = vpop.f32.mrf.mxu2 }
 0x19f   : > { %885 = vst [vmem:[%s1795_s21 + $0xc8] sm:$0xff] %v800_v11 }
 0x1a0   : > { %v690_v12 = vpop.f32.mrf.mxu1 }
 0x1a1   : > { %886 = vst [vmem:[%s1795_s21 + $0xd0] sm:$0xff] %v690_v12 }
 0x1a4   : > { %v848_v13 = vpop.f32.mrf.mxu3 }
 0x1a5   : > { %917 = vst [vmem:[%s1795_s21 + $0x1c8] sm:$0xff] %v848_v13 }
 0x1a6   : > { %v803_v14 = vpop.f32.mrf.mxu2 }
 0x1a7   : > { %887 = vst [vmem:[%s1795_s21 + $0xd8] sm:$0xff] %v803_v14 }
 0x1a8   : > { %v693_v15 = vpop.f32.mrf.mxu1 }
 0x1a9   : > { %888 = vst [vmem:[%s1795_s21 + $0xe0] sm:$0xff] %v693_v15 }
 0x1ac   : > { %v851_v16 = vpop.f32.mrf.mxu3 }
 0x1ad   : > { %919 = vst [vmem:[%s1795_s21 + $0x1d8] sm:$0xff] %v851_v16 }
 0x1ae   : > { %v806_v17 = vpop.f32.mrf.mxu2 }
 0x1af   : > { %889 = vst [vmem:[%s1795_s21 + $0xe8] sm:$0xff] %v806_v17 }
 0x1b0   : > { %v696_v18 = vpop.f32.mrf.mxu1 }
 0x1b1   : > { %890 = vst [vmem:[%s1795_s21 + $0xf0] sm:$0xff] %v696_v18 }
 0x1b4   : > { %v854_v19 = vpop.f32.mrf.mxu3 }
 0x1b5   : > { %921 = vst [vmem:[%s1795_s21 + $0x1e8] sm:$0xff] %v854_v19 }
 0x1b6   : > { %v809_v20 = vpop.f32.mrf.mxu2 }
 0x1b7   : > { %891 = vst [vmem:[%s1795_s21 + $0xf8] sm:$0xff] %v809_v20 }
 0x1b8   : > { %v699_v21 = vpop.f32.mrf.mxu1 }
 0x1b9   : > { %892 = vst [vmem:[%s1795_s21 + $0x100] sm:$0xff] %v699_v21 }
 0x1bc   : > { %v857_v22 = vpop.f32.mrf.mxu3 }
 0x1bd   : > { %923 = vst [vmem:[%s1795_s21 + $0x1f8] sm:$0xff] %v857_v22 }
 0x1be   : > { %v812_v23 = vpop.f32.mrf.mxu2 }
 0x1bf   : > { %893 = vst [vmem:[%s1795_s21 + $0x108] sm:$0xff] %v812_v23 }
 0x1c0   : > { %v702_v24 = vpop.f32.mrf.mxu1 }
 0x1c1   : > { %894 = vst [vmem:[%s1795_s21 + $0x110] sm:$0xff] %v702_v24 }
 0x1c6   : > { %v815_v25 = vpop.f32.mrf.mxu2 }
 0x1c7   : > { %895 = vst [vmem:[%s1795_s21 + $0x118] sm:$0xff] %v815_v25 }
 0x1c8   : > { %v705_v26 = vpop.f32.mrf.mxu1 }
 0x1c9   : > { %896 = vst [vmem:[%s1795_s21 + $0x120] sm:$0xff] %v705_v26 }
 0x1ce   : > { %v818_v27 = vpop.f32.mrf.mxu2 }
 0x1cf   : > { %897 = vst [vmem:[%s1795_s21 + $0x128] sm:$0xff] %v818_v27 }
 0x1d0   : > { %v708_v28 = vpop.f32.mrf.mxu1 }
 0x1d1   : > { %898 = vst [vmem:[%s1795_s21 + $0x130] sm:$0xff] %v708_v28 }
 0x1d6   : > { %v821_v29 = vpop.f32.mrf.mxu2 }
 0x1d7   : > { %899 = vst [vmem:[%s1795_s21 + $0x138] sm:$0xff] %v821_v29 }
 0x1d8   : > { %v711_v30 = vpop.f32.mrf.mxu1 }
 0x1d9   : > { %900 = vst [vmem:[%s1795_s21 + $0x140] sm:$0xff] %v711_v30 }
 0x1de   : > { %v824_v31 = vpop.f32.mrf.mxu2 }
 0x1df   : > { %901 = vst [vmem:[%s1795_s21 + $0x148] sm:$0xff] %v824_v31 }
 0x1e0   : > { %v714_v32 = vpop.f32.mrf.mxu1 }
 0x1e1   : > { %902 = vst [vmem:[%s1795_s21 + $0x150] sm:$0xff] %v714_v32 }
 0x1e6   : > { %v827_v33 = vpop.f32.mrf.mxu2 }
 0x1e7   : > { %903 = vst [vmem:[%s1795_s21 + $0x158] sm:$0xff] %v827_v33 }
 0x1e8   : > { %v717_v34 = vpop.f32.mrf.mxu1 }
 0x1e9   : > { %904 = vst [vmem:[%s1795_s21 + $0x160] sm:$0xff] %v717_v34 }
 0x1ee   : > { %v830_v35 = vpop.f32.mrf.mxu2 }
 0x1ef   : > { %905 = vst [vmem:[%s1795_s21 + $0x168] sm:$0xff] %v830_v35 }
 0x1f0   : > { %v720_v36 = vpop.f32.mrf.mxu1 }
 0x1f1   : > { %906 = vst [vmem:[%s1795_s21 + $0x170] sm:$0xff] %v720_v36 }
 0x1f6   : > { %v833_v37 = vpop.f32.mrf.mxu2 }
 0x1f7   : > { %907 = vst [vmem:[%s1795_s21 + $0x178] sm:$0xff] %v833_v37 }
 0x1f8   : > { %1345 = shalt.err (!%p1342_p13)
}
 0x1f9   : > { %s1427_s9 = smov 256   ;;  %s1428_s7 = smov 16  }
 0x1fa   : > { %1169 = dma.vmem_to_hbm [thread:$0]  (%p1537_p3), %s940_s20, 8192, %s942_s16, %s925_s15, %s1427_s9, %s1427_s9, %s1428_s7  }
 0x1fb PF: > { %s1955_s11 = sld [smem:[#allocation12_spill]]  ;;  %p1186_p0 = scmp.ge.s32.totalorder %s1420_s19, 2 }
 0x1fd   : > { %p1180_p5 = pnand %p1186_p0, %p1508_p6 }
 0x1ff   : > { %p1181_p7 = pneg %p1180_p5 }
 0x201   : > { %s956_s30 = sand.u32 1, %s1955_s11  }
 0x202   : > { %s957_s23 = scalar_lea.sflag [#allocation5], %s956_s30 }
 0x203   : > { %1387 = dma.done.wait (%p1181_p7), %s957_s23, 8192  }
 0x204   : > { %1389 = vsyncadd (%p1181_p7), %s957_s23, 4294959104  ;;  %s20_s19 = sadd.s32 1, %s1420_s19   ;;  %s1957_s15 = sld [smem:[#allocation13_spill]] }
 0x205   : > { %p17_p9 = scmp.ge.s32.totalorder %s20_s19, 8   ;;  %s1958_s17 = sld [smem:[#allocation15_spill]] }
 0x206   : > { %s1959_s12 = smov %s1396_s13  ;;  %s1960_s13 = smov %s1400_s14 }
 0x207   : > { %s1961_s14 = smov %s1554_s6  ;;  %s1962_s16 = smov %s1416_s18 }
 0x208   : > { %s1963_s18 = smov %s1969_s8  ;;  %19 = sbr.rel (!%p17_p9) target bundleno = 10 (0xa), region = 81 }
 0x20d   :  { %963 = vsyncpa [#allocation4], 1 }
 0x20e   :  { %965 = vsyncpa [#allocation4 + $0x1], 1 }
 0x20f   :  { %966 = vsyncpa [#allocation7], 1 }
 0x210   :  { %967 = vsyncpa [#allocation5], 1 }
 0x211   :  { %969 = vsyncpa [#allocation5 + $0x1], 1 }

</bundles_post_ra>
